<compile_context>
chip_gen: v7x
topology: tpu7x:2x2x1
jax: 0.10.0
libtpu: 0.0.40
codegen_flags: <defaults>
</compile_context>

<pallas_src>
import functools

import jax
import jax.numpy as jnp
from jax.experimental import pallas as pl
from jax.experimental.pallas import tpu as pltpu


def _cdiv(a, b):
    return (a + b - 1) // b


def _round_up(n, m):
    return ((n + m - 1) // m) * m


def _logreg_kernel(w_ref, b_ref, xt_ref, o_ref):
    # w_ref: (O, D) SMEM scalars, b_ref: (O,) SMEM scalars,
    # xt_ref: (D, TR, 128) VMEM (batch on sublanes x lanes),
    # o_ref:  (O, TR, 128) VMEM (dense 8x128 output tiles).
    O, D = w_ref.shape
    for o in range(O):                       # O, D are tiny & static -> fully unrolled, pure VPU
        z = w_ref[o, 0] * xt_ref[0]
        for d in range(1, D):
            z = z + w_ref[o, d] * xt_ref[d]
        z = z + b_ref[o]
        # Exact sigmoid: exp on the EUP, full-precision divide on the VPU.
        # (approx reciprocal was ~4e-3 off and failed correctness.)
        o_ref[o] = 1.0 / (1.0 + jnp.exp(-z))


@functools.partial(jax.jit, static_argnames=("tile_rows", "min_kernel_batch"))
def model_forward(x, weight, bias, *, tile_rows=2048, min_kernel_batch=1024):
    """x: (B, D) f32, weight: (O, D) f32, bias: (O,) f32 -> squeeze(sigmoid(x @ W.T + b))."""
    B, D = x.shape
    O = weight.shape[0]

    # Tiny-batch fast path: kernel dispatch + layout plumbing dominate; fused XLA wins.
    if B < min_kernel_batch:
        return jnp.squeeze(jax.nn.sigmoid(x @ weight.T + bias))

    # --- Sublane-dense layout: batch -> (rows, 128) with rows on the sublane axis. ---
    rows = _cdiv(B, 128)                                   # number of 128-lane rows
    # TR: rows per tile, multiple of 8; keep >=2 tiles when possible (v7x megacore),
    # cap at tile_rows (2048 rows -> ~2 MiB input + 1 MiB output per tile for D=2, f32).
    TR = min(tile_rows, _round_up(_cdiv(rows, 2), 8))
    TR = max(TR, 8)
    grid = _cdiv(rows, TR)
    rows_p = grid * TR
    Bp = rows_p * 128

    xt = x.T                                               # (D, B) layout plumbing
    if Bp != B:
        xt = jnp.pad(xt, ((0, 0), (0, Bp - B)))            # padded lanes computed, then dropped
    xt = xt.reshape(D, rows_p, 128)                        # row-major view, no data shuffle

    out = pl.pallas_call(
        _logreg_kernel,
        out_shape=jax.ShapeDtypeStruct((O, rows_p, 128), jnp.float32),
        grid_spec=pltpu.PrefetchScalarGridSpec(
            num_scalar_prefetch=0,
            grid=(grid,),
            in_specs=[
                pl.BlockSpec(memory_space=pltpu.MemorySpace.SMEM),   # weight (O, D): scalars
                pl.BlockSpec(memory_space=pltpu.MemorySpace.SMEM),   # bias   (O,):   scalars
                pl.BlockSpec((D, TR, 128), lambda j: (0, j, 0)),     # x^T tile, 8x128-dense
            ],
            out_specs=pl.BlockSpec((O, TR, 128), lambda j: (0, j, 0)),
        ),
        compiler_params=pltpu.CompilerParams(
            dimension_semantics=("parallel",),   # batch tiles shard across TCs (v7x megacore)
            vmem_limit_bytes=32 * 1024 * 1024,   # double-buffered footprint ~6 MiB at TR=2048
        ),
    )(weight, bias, xt)

    # Back to (B, O), then PyTorch-style .squeeze() (drops all size-1 dims; O==1 -> (B,)).
    out = out.reshape(O, Bp)[:, :B].T
    return jnp.squeeze(out)


if __name__ == "__main__":
    key = jax.random.PRNGKey(0)
    k_x, k_w, k_b = jax.random.split(key, 3)

    batch_size = 8
    input_size = 2    # forward docstring: x has shape (batch_size, 2)
    output_size = 1   # binary classification

    x = jax.random.normal(k_x, (batch_size, input_size), dtype=jnp.float32)
    weight = jax.random.normal(k_w, (output_size, input_size), dtype=jnp.float32)
    bias = jax.random.normal(k_b, (output_size,), dtype=jnp.float32)

    # Force the Pallas path even at the tiny module-native shape (min_kernel_batch=0).
    pred = model_forward(x, weight, bias, min_kernel_batch=0)
    pred = jax.block_until_ready(pred)

    ref = jax.nn.sigmoid(x @ weight.T + bias).squeeze()
    assert pred.shape == (batch_size,), pred.shape
    assert jnp.allclose(pred, ref, atol=1e-5, rtol=1e-5), (pred, ref)

    # Multi-tile / padding check (2 parallel tiles exercise the megacore split path).
    big_B = 4096
    xb = jax.random.normal(k_x, (big_B, input_size), dtype=jnp.float32)
    pred_b = jax.block_until_ready(model_forward(xb, weight, bias, min_kernel_batch=0))
    ref_b = jax.nn.sigmoid(xb @ weight.T + bias).squeeze()
    assert pred_b.shape == (big_B,), pred_b.shape
    assert jnp.allclose(pred_b, ref_b, atol=1e-5, rtol=1e-5)

    print("KERNEL_OK")
</pallas_src>

<mosaic_0001>
module attributes {stable_mosaic.version = 11 : i64} {
  func.func @_logreg_kernel(%arg0: i32, %arg1: memref<1x2xf32, #tpu.memory_space<smem>>, %arg2: memref<1xf32, #tpu.memory_space<smem>>, %arg3: memref<2x8x128xf32, #tpu.memory_space<vmem>>, %arg4: memref<1x8x128xf32, #tpu.memory_space<vmem>>) attributes {dimension_semantics = [#tpu.dimension_semantics<parallel>], iteration_bounds = array<i64: 1>, scalar_prefetch = 0 : i64, scratch_operands = 0 : i64, tpu.core_type = #tpu.core_type<tc>, window_params = [{transform_indices = @transform_0, window_bounds = array<i64: 1, 2>}, {transform_indices = @transform_1, window_bounds = array<i64: 1>}, {transform_indices = @transform_2, window_bounds = array<i64: 2, 8, 128>}, {transform_indices = @transform_3, window_bounds = array<i64: 1, 8, 128>}]} {
    %c0 = arith.constant 0 : index
    %c0_0 = arith.constant 0 : index
    %0 = memref.load %arg1[%c0, %c0_0] : memref<1x2xf32, #tpu.memory_space<smem>>
    %c0_1 = arith.constant 0 : index
    %c0_2 = arith.constant 0 : index
    %c0_3 = arith.constant 0 : index
    %1 = vector.load %arg3[%c0_1, %c0_2, %c0_3] : memref<2x8x128xf32, #tpu.memory_space<vmem>>, vector<1x8x128xf32>
    %2 = vector.shape_cast %1 : vector<1x8x128xf32> to vector<8x128xf32>
    %3 = vector.broadcast %0 : f32 to vector<8x128xf32>
    %4 = arith.mulf %3, %2 : vector<8x128xf32>
    %c0_4 = arith.constant 0 : index
    %c1 = arith.constant 1 : index
    %5 = memref.load %arg1[%c0_4, %c1] : memref<1x2xf32, #tpu.memory_space<smem>>
    %c1_5 = arith.constant 1 : index
    %c0_6 = arith.constant 0 : index
    %c0_7 = arith.constant 0 : index
    %6 = vector.load %arg3[%c1_5, %c0_6, %c0_7] : memref<2x8x128xf32, #tpu.memory_space<vmem>>, vector<1x8x128xf32>
    %7 = vector.shape_cast %6 : vector<1x8x128xf32> to vector<8x128xf32>
    %8 = vector.broadcast %5 : f32 to vector<8x128xf32>
    %9 = arith.mulf %8, %7 : vector<8x128xf32>
    %10 = arith.addf %4, %9 : vector<8x128xf32>
    %c0_8 = arith.constant 0 : index
    %11 = memref.load %arg2[%c0_8] : memref<1xf32, #tpu.memory_space<smem>>
    %12 = vector.broadcast %11 : f32 to vector<8x128xf32>
    %13 = arith.addf %10, %12 : vector<8x128xf32>
    %cst = arith.constant 0.000000e+00 : f32
    %14 = vector.broadcast %cst : f32 to vector<8x128xf32>
    %15 = arith.subf %14, %13 : vector<8x128xf32>
    %16 = math.exp %15 : vector<8x128xf32>
    %cst_9 = arith.constant 1.000000e+00 : f32
    %17 = vector.broadcast %cst_9 : f32 to vector<8x128xf32>
    %18 = arith.addf %17, %16 : vector<8x128xf32>
    %cst_10 = arith.constant 1.000000e+00 : f32
    %19 = vector.broadcast %cst_10 : f32 to vector<8x128xf32>
    %20 = arith.divf %19, %18 : vector<8x128xf32>
    %c0_11 = arith.constant 0 : index
    %c0_12 = arith.constant 0 : index
    %c0_13 = arith.constant 0 : index
    %21 = vector.load %arg4[%c0_11, %c0_12, %c0_13] : memref<1x8x128xf32, #tpu.memory_space<vmem>>, vector<1x8x128xf32>
    %22 = vector.shape_cast %21 : vector<1x8x128xf32> to vector<8x128xf32>
    %23 = vector.shape_cast %20 : vector<8x128xf32> to vector<1x8x128xf32>
    tpu.vector_store %arg4[%c0_11, %c0_12, %c0_13], %23 {strides = array<i32>} : memref<1x8x128xf32, #tpu.memory_space<vmem>>, vector<1x8x128xf32>,
    return
  }
  func.func @transform_0(%arg0: i32) -> (i32, i32) {
    %c0_i32 = arith.constant 0 : i32
    %c0_i32_0 = arith.constant 0 : i32
    %c0_i32_1 = arith.constant 0 : i32
    return %c0_i32, %c0_i32_0 : i32, i32
  }
  func.func @transform_1(%arg0: i32) -> i32 {
    %c0_i32 = arith.constant 0 : i32
    %c0_i32_0 = arith.constant 0 : i32
    return %c0_i32 : i32
  }
  func.func @transform_2(%arg0: i32) -> (i32, i32, i32) {
    %c0_i32 = arith.constant 0 : i32
    %c0_i32_0 = arith.constant 0 : i32
    %c0_i32_1 = arith.constant 0 : i32
    return %c0_i32, %arg0, %c0_i32_0 : i32, i32, i32
  }
  func.func @transform_3(%arg0: i32) -> (i32, i32, i32) {
    %c0_i32 = arith.constant 0 : i32
    %c0_i32_0 = arith.constant 0 : i32
    %c0_i32_1 = arith.constant 0 : i32
    return %c0_i32, %arg0, %c0_i32_0 : i32, i32, i32
  }
}

</mosaic_0001>

<bundles_post_ra>
// kernel: model_forward.1
= control target key start
LH: loop header
LB: loop body
LE: loop exit
PB: predicated region body
PF: predicated region fallthrough
CT: control target
= control target key end

     0   :  { %9 = vsyncpa [#allocation4], 0  ;;  %s110_s0 = inlined_call_operand.vmem [shape: f32[1,2], index: 0, kind: input, shape index: {}]   ;;  %s111_s1 = inlined_call_operand.<no memory space> [shape: f32[1], index: 1, kind: input, shape index: {}]   ;;  %s112_s2 = inlined_call_operand.vmem [shape: f32[2,8,128], index: 2, kind: input, shape index: {}]   ;;  %s113_s3 = inlined_call_operand.vmem [shape: f32[1,8,128], index: 3, kind: output, shape index: {}]  }
   0x1   :  { %s16_s14 = sshll.u32 %s110_s0, 4  ;;  %s17_s14 = int_to_ptr.vmem [resolvable:$true] %s16_s14 }
   0x2   :  { %s60_s15 = scalar_lea.vmem %s17_s14, 16  ;;  %p65_p1 = scmp.lt.s32.totalorder %s17_s14, %s17_s14 }
   0x3   :  { %p61_p0 = scmp.ne.s32.totalorder %s17_s14, %s60_s15  ;;  %p66_p2 = scmp.lt.s32.totalorder %s60_s15, %s60_s15 }
   0x5   :  { %p67_p3 = por %p66_p2, %p65_p1 }
   0x7   :  { %p68_p4 = pnand %p67_p3, %p61_p0 }
   0x9   :  { %71 = shalt.err (!%p68_p4)
}
   0xa   :  { %s74_s16 = smov [#allocation3]  }
   0xb   :  { %19 = dma.vmem_to_smem %s17_s14, 16, %s74_s16, [#allocation4]  }
   0xc   :  { %72 = dma.done.wait [#allocation4], 16  }
   0xd   :  { %73 = vsyncadd [#allocation4], 4294967280 }
   0xe   :  { %27 = sfence }
   0xf   :  { %s28_s17 = sld [smem:[#allocation3]]  ;;  %s53_s18 = sld [smem:[#allocation3 + $0x1]]  ;;  %v29_v0 = vld [vmem:[%s112_s2] sm:$0xff]  ;;  %v54_v1 = vld [vmem:[%s112_s2 + $0x8] sm:$0xff]  ;;  %v39_v6 = vstv %s111_s1 }
  0x15   :  { %v30_v2 = vstv %s28_s17  ;;  %v35_v3 = vstv %s53_s18 }
  0x16   :  { %v31_v4 = vmul.f32 %v30_v2, %v29_v0  ;;  %v36_v5 = vmul.f32 %v54_v1, %v35_v3 }
  0x18   :  { %v37_v7 = vadd.f32 %v36_v5, %v31_v4 }
  0x1a   :  { %v40_v8 = vadd.f32 %v39_v6, %v37_v7 }
  0x1c   :  { %v41_v9 = vsub.f32 0.0, %v40_v8 }
  0x1e   :  { %v42_v10 = vmul.f32 1.442695, %v41_v9 }
  0x20   :  { %56 = vpow2.f32 %v42_v10 }
  0x2a   :  { %v57_v11 = vpop.eup %56 }
  0x2b   :  { %v44_v12 = vadd.f32 1.0, %v57_v11 }
  0x2d   :  { %58 = vrcp.f32 %v44_v12 }
  0x37   :  { %v59_v13 = vpop.eup %58 }
  0x38   :  { %47 = vst [vmem:[%s113_s3] sm:$0xff] %v59_v13 }
  0x39   :  { %52 = vsyncpa [#allocation4], 1 }

</bundles_post_ra>
